<compile_context>
chip_gen: v7x
topology: tpu7x:2x2x1
jax: 0.10.0
libtpu: 0.0.40
codegen_flags: <defaults>
</compile_context>

<pallas_src>
import jax
import jax.numpy as jnp
import numpy as np
from jax.experimental import pallas as pl
from jax.experimental.pallas import tpu as pltpu

LANE = 128
SUBLANE = 8


def _round_up(x, m):
    return (x + m - 1) // m * m


def _pick_time_block(T, cap=32):
    tt = min(T, cap)
    while T % tt != 0:
        tt -= 1
    return tt


# ---------------------------------------------------------------------------
# Parameter preparation (done once, offline).
# ---------------------------------------------------------------------------
def prepare_params(w_ih, w_hh, b_ih, b_hh, *, input_size, read_size, hidden,
                   compute_dtype=jnp.float32):
    """Repack PyTorch-layout LSTM weights into ONE lane-padded combined slab.

    w_ih: (4H, input_size + read_size)   PyTorch gate order [i, f, g, o]
    w_hh: (4H, H)
    b_ih, b_hh: (4H,)

    Combined weight w (Hp, 4*Hp):
      rows 0..H-1              -> recurrent weights  (w_hh.T per gate)
      rows H..H+input_size-1   -> x weights          (w_ih[:, :in].T)
      rows H+in..H+in+rs-1     -> read weights       (w_ih[:, in:].T)
      remaining rows / padded gate columns -> 0
    so a single  z @ w + b  with  z = [h | x | read | 0]  reproduces the
    PyTorch gate pre-activations exactly.
    """
    H = hidden
    in_total = input_size + read_size
    Hp = max(LANE, _round_up(H, LANE))
    assert H + in_total <= Hp, "x|read must fit in the padded lanes of h"
    assert H > 2 + read_size, "hidden must exceed 2 + read_size"

    w_ih_g = np.asarray(w_ih, np.float32).reshape(4, H, in_total)
    w_hh_g = np.asarray(w_hh, np.float32).reshape(4, H, H)
    b_g = (np.asarray(b_ih, np.float32) + np.asarray(b_hh, np.float32)).reshape(4, H)

    w = np.zeros((Hp, 4 * Hp), np.float32)
    b = np.zeros((1, 4 * Hp), np.float32)
    for g in range(4):
        lo = g * Hp
        w[0:H, lo:lo + H] = w_hh_g[g].T
        w[H:H + input_size, lo:lo + H] = w_ih_g[g, :, :input_size].T
        w[H + input_size:H + in_total, lo:lo + H] = w_ih_g[g, :, input_size:].T
        b[0, lo:lo + H] = b_g[g]

    return dict(
        w=jnp.asarray(w, compute_dtype),        # (Hp, 4Hp) compute dtype
        b=jnp.asarray(b, jnp.float32),          # bias kept f32 (added to f32 acc)
        H=H, Hp=Hp, input_size=input_size, read_size=read_size,
        compute_dtype=compute_dtype)


def init_state(batch, params):
    """Zero LSTM state in the padded (Bp, Hp) layout (matches init_stack).

    h is stored in the compute dtype; c always in f32.
    Padded lanes / padded batch rows MUST stay zero (see invariants above).
    """
    Bp = _round_up(batch, SUBLANE)
    Hp = params["Hp"]
    return (jnp.zeros((Bp, Hp), params["compute_dtype"]),
            jnp.zeros((Bp, Hp), jnp.float32))


def _pack_xr(params, x, read, Bp):
    """Pack x and read into the padded lanes H..H+in+rs of a (Bp, Hp) slab."""
    H, Hp = params["H"], params["Hp"]
    in_size, rs = params["input_size"], params["read_size"]
    dt = params["compute_dtype"]
    B = x.shape[0]
    xr = jnp.zeros((Bp, Hp), dt)
    xr = xr.at[:B, H:H + in_size].set(x.astype(dt))
    xr = xr.at[:B, H + in_size:H + in_size + rs].set(read.astype(dt))
    return xr


# ---------------------------------------------------------------------------
# Single-step kernel (matches LSTM_Controller.forward exactly).
# ---------------------------------------------------------------------------
def _make_step_kernel(Hp):
    def kernel(xr_ref, h_ref, c_ref, w_ref, b_ref, h_out_ref, c_out_ref):
        z = xr_ref[...] + h_ref[...]                    # [h | x | read | 0]
        gates = jnp.dot(z, w_ref[...],
                        preferred_element_type=jnp.float32) + b_ref[...]
        # PyTorch nn.LSTM gate order: input, forget, cell(g), output.
        i = jax.nn.sigmoid(gates[:, 0 * Hp:1 * Hp])
        f = jax.nn.sigmoid(gates[:, 1 * Hp:2 * Hp])
        g = jnp.tanh(gates[:, 2 * Hp:3 * Hp])
        o = jax.nn.sigmoid(gates[:, 3 * Hp:4 * Hp])

        c_new = f * c_ref[...] + i * g
        h_new = o * jnp.tanh(c_new)

        h_out_ref[...] = h_new.astype(h_out_ref.dtype)
        c_out_ref[...] = c_new

    return kernel


def lstm_controller_step(params, x, read, h, c):
    """One LSTM_Controller.forward step.

    Prefer lstm_controller_forward_seq for long sequences: each single-step
    pallas_call is launch/HBM-round-trip bound.

    x:    (B, input_size)
    read: (B, read_size)        (produced externally by the Stack)
    h, c: (Bp, Hp)  padded recurrent state (see init_state) — DONATED.

    Returns (controller_output, read_params, (h_new, c_new)).
    """
    B = x.shape[0]
    H, Hp, rs = params["H"], params["Hp"], params["read_size"]
    dt = params["compute_dtype"]
    Bp = h.shape[0]

    xr = _pack_xr(params, x, read, Bp)

    kernel = _make_step_kernel(Hp)
    vmem = pl.BlockSpec(memory_space=pltpu.MemorySpace.VMEM)

    flops = 2 * Bp * Hp * 4 * Hp
    transcendentals = 6 * Bp * Hp
    bytes_accessed = 4 * (5 * Bp * Hp + (Hp + 1) * 4 * Hp)

    h_new, c_new = pl.pallas_call(
        kernel,
        in_specs=[vmem] * 5,
        out_specs=(vmem, vmem),
        out_shape=(
            jax.ShapeDtypeStruct((Bp, Hp), dt),
            jax.ShapeDtypeStruct((Bp, Hp), jnp.float32),
        ),
        input_output_aliases={1: 0, 2: 1},   # h, c updated in place
        cost_estimate=pl.CostEstimate(
            flops=flops, transcendentals=transcendentals,
            bytes_accessed=bytes_accessed),
    )(xr, h, c, params["w"], params["b"])

    # Narrow slices / sigmoid stay in the XLA wrapper (fused, no masked vst).
    read_params = jax.nn.sigmoid(h_new[:B, :2 + rs].astype(jnp.float32))
    out = h_new[:B, 2 + rs:H].astype(jnp.float32)
    # u, d, v = read_params[:,0], read_params[:,1], read_params[:,2:]
    # TODO(synk): Stack.forward(v, u, d) is not defined in the reference
    # module; the update of self.read is left to the caller.
    return out, read_params, (h_new, c_new)


# ---------------------------------------------------------------------------
# Fused multi-step kernel:
#   grid=(batch_blocks, T//TT), resident weights, h/c carried in VMEM scratch,
#   inner unrolled loop over TT timesteps per grid step.
# ---------------------------------------------------------------------------
def _make_seq_kernel(Hp, TT):
    def kernel(xr_ref, h0_ref, c0_ref, w_ref, b_ref,
               hseq_ref, clast_ref, h_s, c_s):
        t_blk = pl.program_id(1)

        @pl.when(t_blk == 0)
        def _():
            h_s[...] = h0_ref[...]
            c_s[...] = c0_ref[...]

        w = w_ref[...]          # resident weight slab (hoisted out of the loop)
        bias = b_ref[...]

        def step(tt, carry):
            z = xr_ref[tt] + h_s[...]           # [h | x_t | read_t | 0]
            gates = jnp.dot(z, w, preferred_element_type=jnp.float32) + bias
            i = jax.nn.sigmoid(gates[:, 0 * Hp:1 * Hp])
            f = jax.nn.sigmoid(gates[:, 1 * Hp:2 * Hp])
            g = jnp.tanh(gates[:, 2 * Hp:3 * Hp])
            o = jax.nn.sigmoid(gates[:, 3 * Hp:4 * Hp])

            c_new = f * c_s[...] + i * g
            h_new = (o * jnp.tanh(c_new)).astype(h_s.dtype)

            h_s[...] = h_new
            c_s[...] = c_new
            hseq_ref[tt] = h_new
            return carry

        jax.lax.fori_loop(0, TT, step, 0, unroll=True)

        @pl.when(t_blk == pl.num_programs(1) - 1)
        def _():
            clast_ref[...] = c_s[...]           # written back once at the end

    return kernel


def lstm_controller_forward_seq(params, xs, reads, h0, c0, *,
                                time_block=None, batch_block=None):
    """Run T controller steps in ONE pallas_call (amortizes launch/weight DMA).

    xs:     (T, B, input_size)
    reads:  (T, B, read_size)   per-step read vectors (external, see TODO)
    h0, c0: (Bp, Hp)            padded initial state (init_state)

    batch_block: sublane-multiple batch tile; on v7x set batch_block=Bp//2 to
    shard the (serial-in-time) recurrence across the two TensorCores.
    """
    T, B, in_size = xs.shape
    H, Hp, rs = params["H"], params["Hp"], params["read_size"]
    dt = params["compute_dtype"]
    Bp = h0.shape[0]

    TT = time_block if time_block is not None else _pick_time_block(T)
    assert T % TT == 0, "T must be a multiple of the time block"
    BB = batch_block if batch_block is not None else Bp
    assert Bp % BB == 0 and BB % SUBLANE == 0
    NB, NT = Bp // BB, T // TT

    # Pack x|read into the padded lanes of the state layout (one DMA stream).
    xr = jnp.zeros((T, Bp, Hp), dt)
    xr = xr.at[:, :B, H:H + in_size].set(xs.astype(dt))
    xr = xr.at[:, :B, H + in_size:H + in_size + rs].set(reads.astype(dt))

    kernel = _make_seq_kernel(Hp, TT)

    flops = 2 * T * Bp * Hp * 4 * Hp
    transcendentals = 6 * T * Bp * Hp
    bytes_accessed = 4 * (2 * T * Bp * Hp + (Hp + 1) * 4 * Hp + 4 * Bp * Hp)

    h_seq, c_last = pl.pallas_call(
        kernel,
        grid_spec=pltpu.PrefetchScalarGridSpec(
            num_scalar_prefetch=0,
            grid=(NB, NT),
            in_specs=[
                pl.BlockSpec((TT, BB, Hp), lambda b, t: (t, b, 0)),   # xr block
                pl.BlockSpec((BB, Hp), lambda b, t: (b, 0)),          # h0 resident
                pl.BlockSpec((BB, Hp), lambda b, t: (b, 0)),          # c0 resident
                pl.BlockSpec((Hp, 4 * Hp), lambda b, t: (0, 0)),      # W resident
                pl.BlockSpec((1, 4 * Hp), lambda b, t: (0, 0)),       # bias resident
            ],
            out_specs=(
                pl.BlockSpec((TT, BB, Hp), lambda b, t: (t, b, 0)),   # h_seq
                pl.BlockSpec((BB, Hp), lambda b, t: (b, 0)),          # c_last
            ),
            scratch_shapes=[
                pltpu.VMEM((BB, Hp), dt),           # h carried across time blocks
                pltpu.VMEM((BB, Hp), jnp.float32),  # c carried across time blocks
            ],
        ),
        out_shape=(
            jax.ShapeDtypeStruct((T, Bp, Hp), dt),
            jax.ShapeDtypeStruct((Bp, Hp), jnp.float32),
        ),
        compiler_params=pltpu.CompilerParams(
            dimension_semantics=("parallel", "arbitrary")),
        cost_estimate=pl.CostEstimate(
            flops=flops, transcendentals=transcendentals,
            bytes_accessed=bytes_accessed),
    )(xr, h0, c0, params["w"], params["b"])

    outs = h_seq[:, :B, 2 + rs:H].astype(jnp.float32)       # (T, B, output_size)
    read_params = jax.nn.sigmoid(h_seq[:, :B, :2 + rs].astype(jnp.float32))
    return outs, read_params, (h_seq[-1], c_last)


# ---------------------------------------------------------------------------
# Pure-JAX reference (PyTorch semantics).
# ---------------------------------------------------------------------------
def _reference_step(x, read, h, c, w_ih, w_hh, bias, *, H, read_size):
    xin = jnp.concatenate([x, read], axis=1)
    gates = xin @ w_ih.T + h @ w_hh.T + bias
    i = jax.nn.sigmoid(gates[:, 0 * H:1 * H])
    f = jax.nn.sigmoid(gates[:, 1 * H:2 * H])
    g = jnp.tanh(gates[:, 2 * H:3 * H])
    o = jax.nn.sigmoid(gates[:, 3 * H:4 * H])
    c_new = f * c + i * g
    h_new = o * jnp.tanh(c_new)
    rp = jax.nn.sigmoid(h_new[:, :2 + read_size])
    out = h_new[:, 2 + read_size:]
    return out, rp, (h_new, c_new)


if __name__ == "__main__":
    # Small shapes consistent with the module.
    batch = 2
    input_size = 4
    read_size = 4
    output_size = 6
    hidden = 2 + read_size + output_size          # = 12
    in_dim = input_size + read_size               # = 8
    T = 8                                         # fused sequence length

    key = jax.random.PRNGKey(0)
    k_x, k_xs, k_r, k_wih, k_whh = jax.random.split(key, 5)

    # Parameter init matching the module: weights ~ U(-0.1, 0.1), biases = 0.
    w_ih = jax.random.uniform(k_wih, (4 * hidden, in_dim),
                              minval=-0.1, maxval=0.1, dtype=jnp.float32)
    w_hh = jax.random.uniform(k_whh, (4 * hidden, hidden),
                              minval=-0.1, maxval=0.1, dtype=jnp.float32)
    b_ih = jnp.zeros((4 * hidden,), jnp.float32)
    b_hh = jnp.zeros((4 * hidden,), jnp.float32)
    bias_row = (b_ih + b_hh)[None, :]

    params = prepare_params(w_ih, w_hh, b_ih, b_hh,
                            input_size=input_size, read_size=read_size,
                            hidden=hidden, compute_dtype=jnp.float32)

    # ---------------- single step (module semantics, f32) ----------------
    x = jax.random.normal(k_x, (batch, input_size), jnp.float32)
    read = jnp.zeros((batch, read_size), jnp.float32)   # init_stack(): read = 0
    h0p, c0p = init_state(batch, params)

    out, rp, (h1p, c1p) = lstm_controller_step(params, x, read, h0p, c0p)
    jax.block_until_ready((out, rp, h1p, c1p))

    h0 = jnp.zeros((batch, hidden), jnp.float32)
    c0 = jnp.zeros((batch, hidden), jnp.float32)
    ref_out, ref_rp, (ref_h1, ref_c1) = _reference_step(
        x, read, h0, c0, w_ih, w_hh, bias_row, H=hidden, read_size=read_size)

    assert out.shape == (batch, output_size)
    assert rp.shape == (batch, 2 + read_size)
    assert np.allclose(np.asarray(out), np.asarray(ref_out), atol=1e-5)
    assert np.allclose(np.asarray(rp), np.asarray(ref_rp), atol=1e-5)
    assert np.allclose(np.asarray(h1p[:batch, :hidden]), np.asarray(ref_h1), atol=1e-5)
    assert np.allclose(np.asarray(c1p[:batch, :hidden]), np.asarray(ref_c1), atol=1e-5)

    # ---------------- fused T-step recurrence (f32) ----------------
    xs = jax.random.normal(k_xs, (T, batch, input_size), jnp.float32)
    reads = jax.random.normal(k_r, (T, batch, read_size), jnp.float32)
    h0p, c0p = init_state(batch, params)

    outs, rps, (h_last, c_last) = lstm_controller_forward_seq(
        params, xs, reads, h0p, c0p)
    jax.block_until_ready((outs, rps, h_last, c_last))

    h_ref = jnp.zeros((batch, hidden), jnp.float32)
    c_ref = jnp.zeros((batch, hidden), jnp.float32)
    ref_outs, ref_rps = [], []
    for t in range(T):
        o_t, rp_t, (h_ref, c_ref) = _reference_step(
            xs[t], reads[t], h_ref, c_ref, w_ih, w_hh, bias_row,
            H=hidden, read_size=read_size)
        ref_outs.append(o_t)
        ref_rps.append(rp_t)
    ref_outs = jnp.stack(ref_outs)
    ref_rps = jnp.stack(ref_rps)

    assert outs.shape == (T, batch, output_size)
    assert np.allclose(np.asarray(outs), np.asarray(ref_outs), atol=1e-5)
    assert np.allclose(np.asarray(rps), np.asarray(ref_rps), atol=1e-5)
    assert np.allclose(np.asarray(h_last[:batch, :hidden]), np.asarray(h_ref), atol=1e-5)
    assert np.allclose(np.asarray(c_last[:batch, :hidden]), np.asarray(c_ref), atol=1e-5)

    # ---------------- fused recurrence, bf16 compute path (v6e/v7x) --------
    params_bf16 = prepare_params(w_ih, w_hh, b_ih, b_hh,
                                 input_size=input_size, read_size=read_size,
                                 hidden=hidden, compute_dtype=jnp.bfloat16)
    h0b, c0b = init_state(batch, params_bf16)
    outs_b, rps_b, (h_last_b, c_last_b) = lstm_controller_forward_seq(
        params_bf16, xs, reads, h0b, c0b)
    jax.block_until_ready((outs_b, rps_b, h_last_b, c_last_b))

    assert np.allclose(np.asarray(outs_b), np.asarray(ref_outs), atol=5e-2)
    assert np.allclose(np.asarray(rps_b), np.asarray(ref_rps), atol=5e-2)
    assert np.allclose(np.asarray(h_last_b.astype(jnp.float32))[:batch, :hidden],
                       np.asarray(h_ref), atol=5e-2)
    assert np.allclose(np.asarray(c_last_b)[:batch, :hidden],
                       np.asarray(c_ref), atol=5e-2)

    print("KERNEL_OK")
</pallas_src>

<mosaic_0001>
module attributes {stable_mosaic.version = 11 : i64} {
  func.func @kernel(%arg0: memref<8x128xf32, #tpu.memory_space<vmem>>, %arg1: memref<8x128xf32, #tpu.memory_space<vmem>>, %arg2: memref<8x128xf32, #tpu.memory_space<vmem>>, %arg3: memref<128x512xf32, #tpu.memory_space<vmem>>, %arg4: memref<1x512xf32, #tpu.memory_space<vmem>>, %arg5: memref<8x128xf32, #tpu.memory_space<vmem>>, %arg6: memref<8x128xf32, #tpu.memory_space<vmem>>) attributes {dimension_semantics = [], scalar_prefetch = 0 : i64, scratch_operands = 0 : i64, tpu.core_type = #tpu.core_type<tc>} {
    %c0 = arith.constant 0 : index
    %c0_0 = arith.constant 0 : index
    %0 = vector.load %arg0[%c0, %c0_0] : memref<8x128xf32, #tpu.memory_space<vmem>>, vector<8x128xf32>
    %c0_1 = arith.constant 0 : index
    %c0_2 = arith.constant 0 : index
    %1 = vector.load %arg1[%c0_1, %c0_2] : memref<8x128xf32, #tpu.memory_space<vmem>>, vector<8x128xf32>
    %2 = arith.addf %0, %1 : vector<8x128xf32>
    %c0_3 = arith.constant 0 : index
    %c0_4 = arith.constant 0 : index
    %3 = vector.load %arg3[%c0_3, %c0_4] : memref<128x512xf32, #tpu.memory_space<vmem>>, vector<128x512xf32>
    %cst = arith.constant dense<0.000000e+00> : vector<8x512xf32>
    %4 = tpu.matmul %2, %3, %cst {dimension_numbers = #tpu.dot_dimension_numbers<[1], [0], [0], [1], [0, 0, 1, 1], [], []>} : vector<8x128xf32>, vector<128x512xf32>, vector<8x512xf32> -> vector<8x512xf32>
    %c0_5 = arith.constant 0 : index
    %c0_6 = arith.constant 0 : index
    %5 = vector.load %arg4[%c0_5, %c0_6] : memref<1x512xf32, #tpu.memory_space<vmem>>, vector<1x512xf32>
    %6 = vector.broadcast %5 : vector<1x512xf32> to vector<8x512xf32>
    %7 = arith.addf %4, %6 : vector<8x512xf32>
    %8 = vector.extract_strided_slice %7 {offsets = [0, 0], sizes = [8, 128], strides = [1, 1]} : vector<8x512xf32> to vector<8x128xf32>
    %9 = arith.negf %8 : vector<8x128xf32>
    %10 = math.exp %9 : vector<8x128xf32>
    %cst_7 = arith.constant 1.000000e+00 : f32
    %11 = vector.broadcast %cst_7 : f32 to vector<8x128xf32>
    %12 = arith.addf %11, %10 : vector<8x128xf32>
    %13 = arith.divf %11, %12 : vector<8x128xf32>
    %14 = vector.extract_strided_slice %7 {offsets = [0, 128], sizes = [8, 128], strides = [1, 1]} : vector<8x512xf32> to vector<8x128xf32>
    %15 = arith.negf %14 : vector<8x128xf32>
    %16 = math.exp %15 : vector<8x128xf32>
    %cst_8 = arith.constant 1.000000e+00 : f32
    %17 = vector.broadcast %cst_8 : f32 to vector<8x128xf32>
    %18 = arith.addf %17, %16 : vector<8x128xf32>
    %19 = arith.divf %17, %18 : vector<8x128xf32>
    %20 = vector.extract_strided_slice %7 {offsets = [0, 256], sizes = [8, 128], strides = [1, 1]} : vector<8x512xf32> to vector<8x128xf32>
    %21 = math.tanh %20 : vector<8x128xf32>
    %22 = vector.extract_strided_slice %7 {offsets = [0, 384], sizes = [8, 128], strides = [1, 1]} : vector<8x512xf32> to vector<8x128xf32>
    %23 = arith.negf %22 : vector<8x128xf32>
    %24 = math.exp %23 : vector<8x128xf32>
    %cst_9 = arith.constant 1.000000e+00 : f32
    %25 = vector.broadcast %cst_9 : f32 to vector<8x128xf32>
    %26 = arith.addf %25, %24 : vector<8x128xf32>
    %27 = arith.divf %25, %26 : vector<8x128xf32>
    %c0_10 = arith.constant 0 : index
    %c0_11 = arith.constant 0 : index
    %28 = vector.load %arg2[%c0_10, %c0_11] : memref<8x128xf32, #tpu.memory_space<vmem>>, vector<8x128xf32>
    %29 = arith.mulf %19, %28 : vector<8x128xf32>
    %30 = arith.mulf %13, %21 : vector<8x128xf32>
    %31 = arith.addf %29, %30 : vector<8x128xf32>
    %32 = math.tanh %31 : vector<8x128xf32>
    %33 = arith.mulf %27, %32 : vector<8x128xf32>
    %c0_12 = arith.constant 0 : index
    %c0_13 = arith.constant 0 : index
    %34 = vector.load %arg5[%c0_12, %c0_13] : memref<8x128xf32, #tpu.memory_space<vmem>>, vector<8x128xf32>
    tpu.vector_store %arg5[%c0_12, %c0_13], %33 {strides = array<i32>} : memref<8x128xf32, #tpu.memory_space<vmem>>, vector<8x128xf32>,
    %c0_14 = arith.constant 0 : index
    %c0_15 = arith.constant 0 : index
    %35 = vector.load %arg6[%c0_14, %c0_15] : memref<8x128xf32, #tpu.memory_space<vmem>>, vector<8x128xf32>
    tpu.vector_store %arg6[%c0_14, %c0_15], %31 {strides = array<i32>} : memref<8x128xf32, #tpu.memory_space<vmem>>, vector<8x128xf32>,
    return
  }
}

</mosaic_0001>

<bundles_post_ra>
// kernel: tpu_custom_call.1
= control target key start
LH: loop header
LB: loop body
LE: loop exit
PB: predicated region body
PF: predicated region fallthrough
CT: control target
= control target key end

     0   :  { %12 = vsyncpa [#allocation3], 0  ;;  %s667_s0 = inlined_call_operand.vmem [shape: f32[8,128], index: 0, kind: input, shape index: {}]   ;;  %s668_s1 = inlined_call_operand.hbm [shape: f32[8,128], index: 1, kind: input, shape index: {}, may-alias: {1,5}]   ;;  %s669_s2 = inlined_call_operand.hbm [shape: f32[8,128], index: 2, kind: input, shape index: {}, may-alias: {2,6}]   ;;  %s670_s3 = inlined_call_operand.hbm [shape: f32[128,512], index: 3, kind: input, shape index: {}]   ;;  %s671_s4 = inlined_call_operand.vmem [shape: f32[1,512], index: 4, kind: input, shape index: {}]   ;;  %s672_s5 = inlined_call_operand.hbm [shape: f32[8,128], index: 5, kind: output, shape index: {0}, may-alias: {1,5}]   ;;  %s673_s6 = inlined_call_operand.hbm [shape: f32[8,128], index: 6, kind: output, shape index: {1}, may-alias: {2,6}]  }
   0x1   :  { %13 = vsyncpa [#allocation6], 0 }
   0x2   :  { %14 = vsyncpa [#allocation4], 0 }
   0x3   :  { %15 = vsyncpa [#allocation10], 0  ;;  %s558_s21 = smov [#allocation5]   ;;  %s559_s23 = smov [#allocation2]  }
   0x4   :  { %s34_s22 = sshll.u32 %s558_s21, 4  ;;  %s24_s24 = sshll.u32 %s559_s23, 4  ;;  %s35_s22 = int_to_ptr.vmem [resolvable:$true] %s34_s22  ;;  %s25_s24 = int_to_ptr.vmem [resolvable:$true] %s24_s24 }
   0x5   :  { %s440_s27 = scalar_lea.hbm %s669_s2, 128 }
   0x6   :  { %p441_p0 = scmp.ne.s32.totalorder %s669_s2, %s440_s27  ;;  %p444_p1 = scmp.lt.u32.totalorder %s440_s27, %s669_s2 }
   0x8   :  { %p446_p2 = pnand %p444_p1, %p441_p0 }
   0xa   :  { %449 = shalt.err (!%p446_p2)
}
   0xb   :  { %s450_s8 = scalar_lea.vmem %s35_s22, 128  ;;  %p455_p4 = scmp.lt.s32.totalorder %s35_s22, %s35_s22 }
   0xc   :  { %p451_p3 = scmp.ne.s32.totalorder %s35_s22, %s450_s8  ;;  %p456_p5 = scmp.lt.s32.totalorder %s450_s8, %s450_s8 }
   0xe   :  { %p457_p6 = por %p456_p5, %p455_p4 }
  0x10   :  { %p458_p7 = pnand %p457_p6, %p451_p3 }
  0x12   :  { %461 = shalt.err (!%p458_p7)
}
  0x13   :  { %37 = dma.hbm_to_vmem [thread:$0]  %s669_s2, 128, %s35_s22, [#allocation6]  }
  0x14   :  { %s462_s13 = scalar_lea.hbm %s668_s1, 128 }
  0x15   :  { %p463_p8 = scmp.ne.s32.totalorder %s668_s1, %s462_s13  ;;  %p466_p9 = scmp.lt.u32.totalorder %s462_s13, %s668_s1 }
  0x17   :  { %p468_p10 = pnand %p466_p9, %p463_p8 }
  0x19   :  { %471 = shalt.err (!%p468_p10)
}
  0x1a   :  { %s472_s18 = scalar_lea.vmem %s25_s24, 128  ;;  %p477_p12 = scmp.lt.s32.totalorder %s25_s24, %s25_s24 }
  0x1b   :  { %p473_p11 = scmp.ne.s32.totalorder %s25_s24, %s472_s18  ;;  %p478_p13 = scmp.lt.s32.totalorder %s472_s18, %s472_s18 }
  0x1d   :  { %p479_p0 = por %p478_p13, %p477_p12 }
  0x1f   :  { %p480_p1 = pnand %p479_p0, %p473_p11 }
  0x21   :  { %483 = shalt.err (!%p480_p1)
}
  0x22   :  { %27 = dma.hbm_to_vmem [thread:$0]  %s668_s1, 128, %s25_s24, [#allocation3]  }
  0x23   :  { %s560_s20 = smov [#allocation7]   ;;  %s484_s25 = scalar_lea.hbm %s670_s3, 8192 }
  0x24   :  { %s43_s21 = sshll.u32 %s560_s20, 4  ;;  %p485_p2 = scmp.ne.s32.totalorder %s670_s3, %s484_s25  ;;  %s44_s21 = int_to_ptr.vmem [resolvable:$true] %s43_s21 }
  0x25   :  { %p488_p3 = scmp.lt.u32.totalorder %s484_s25, %s670_s3 }
  0x27   :  { %p490_p4 = pnand %p488_p3, %p485_p2 }
  0x29   :  { %493 = shalt.err (!%p490_p4)
}
  0x2a   :  { %s494_s30 = scalar_lea.vmem %s44_s21, 8192  ;;  %p499_p6 = scmp.lt.s32.totalorder %s44_s21, %s44_s21 }
  0x2b   :  { %p495_p5 = scmp.ne.s32.totalorder %s44_s21, %s494_s30  ;;  %p500_p7 = scmp.lt.s32.totalorder %s494_s30, %s494_s30 }
  0x2d   :  { %p501_p8 = por %p500_p7, %p499_p6 }
  0x2f   :  { %p502_p9 = pnand %p501_p8, %p495_p5 }
  0x31   :  { %505 = shalt.err (!%p502_p9)
}
  0x32   :  { %s561_s1 = smov 512   ;;  %s562_s24 = smov 32  }
  0x33   :  { %49 = dma.hbm_to_vmem [thread:$0]  %s670_s3, 8192, %s44_s21, [#allocation6], %s561_s1, %s561_s1, %s562_s24  }
  0x34   :  { %550 = dma.done.wait [#allocation3], 128  }
  0x35   :  { %551 = vsyncadd [#allocation3], 4294967168 }
  0x36   :  { %552 = dma.done.wait [#allocation6], 8320  }
  0x37   :  { %553 = vsyncadd [#allocation6], 4294958976  ;;  %v563_v0 = vmov 0.0   ;;  %v65_v1 = vld [vmem:[#allocation7 + $0x8] sm:$0xff]  ;;  %v64_v3 = vld [vmem:[#allocation7] sm:$0xff] }
  0x38   :  { %214 = vmatprep.mubr.f32.mxu0 %v563_v0  ;;  %285 = vmatprep.mubr.f32.mxu1 %v563_v0  ;;  %v69_v2 = vld [vmem:[#allocation7 + $0x28] sm:$0xff]  ;;  %v68_v5 = vld [vmem:[#allocation7 + $0x20] sm:$0xff]  ;;  %v67_v19 = vld [vmem:[#allocation7 + $0x18] sm:$0xff] }
  0x39   :  { %v352_v4 = vpack.c.bf16 %v69_v2, %v65_v1  ;;  %v73_v6 = vld [vmem:[#allocation7 + $0x48] sm:$0xff]  ;;  %v354_v8 = vpack.c.bf16 %v68_v5, %v64_v3  ;;  %v72_v10 = vld [vmem:[#allocation7 + $0x40] sm:$0xff]  ;;  %v71_v20 = vld [vmem:[#allocation7 + $0x38] sm:$0xff] }
  0x3a   :  { %v77_v7 = vld [vmem:[#allocation7 + $0x68] sm:$0xff]  ;;  %v76_v11 = vld [vmem:[#allocation7 + $0x60] sm:$0xff]  ;;  %v384_v22 = vpack.c.bf16 %v71_v20, %v67_v19  ;;  %v66_v23 = vld [vmem:[#allocation7 + $0x10] sm:$0xff] }
  0x3b   :  { %v356_v9 = vpack.c.bf16 %v77_v7, %v73_v6  ;;  %v81_v12 = vld [vmem:[#allocation7 + $0x88] sm:$0xff]  ;;  %353 = vmatprep.subr.bf16.mxu0 %v352_v4  ;;  %v358_v14 = vpack.c.bf16 %v76_v11, %v72_v10  ;;  %v80_v15 = vld [vmem:[#allocation7 + $0x80] sm:$0xff]  ;;  %v70_v24 = vld [vmem:[#allocation7 + $0x30] sm:$0xff] }
  0x3c   :  { %v85_v13 = vld [vmem:[#allocation7 + $0xa8] sm:$0xff]  ;;  %355 = vmatpush1.bf16.msra.mxu0 %v354_v8  ;;  %v84_v16 = vld [vmem:[#allocation7 + $0xa0] sm:$0xff]  ;;  %v386_v25 = vpack.c.bf16 %v70_v24, %v66_v23  ;;  %385 = vmatprep.subr.bf16.mxu1 %v384_v22  ;;  %v75_v27 = vld [vmem:[#allocation7 + $0x58] sm:$0xff] }
  0x3d   :  { %357 = vmatprep.subr.bf16.mxu0 %v356_v9  ;;  %v360_v17 = vpack.c.bf16 %v85_v13, %v81_v12  ;;  %v89_v18 = vld [vmem:[#allocation7 + $0xc8] sm:$0xff]  ;;  %v362_v26 = vpack.c.bf16 %v84_v16, %v80_v15  ;;  %v79_v28 = vld [vmem:[#allocation7 + $0x78] sm:$0xff]  ;;  %v74_v29 = vld [vmem:[#allocation7 + $0x50] sm:$0xff] }
  0x3e   :  { %v93_v21 = vld [vmem:[#allocation7 + $0xe8] sm:$0xff]  ;;  %v88_v31 = vld [vmem:[#allocation7 + $0xc0] sm:$0xff]  ;;  %387 = vmatpush1.bf16.msra.mxu1 %v386_v25  ;;  %v388_v33 = vpack.c.bf16 %v79_v28, %v75_v27  ;;  %v78_v34 = vld [vmem:[#allocation7 + $0x70] sm:$0xff] }
  0x3f   :  { %v364_v30 = vpack.c.bf16 %v93_v21, %v89_v18  ;;  %v92_v32 = vld [vmem:[#allocation7 + $0xe0] sm:$0xff]  ;;  %v97_v35 = vld [vmem:[#allocation7 + $0x108] sm:$0xff]  ;;  %v390_v37 = vpack.c.bf16 %v78_v34, %v74_v29  ;;  %v83_v38 = vld [vmem:[#allocation7 + $0x98] sm:$0xff] }
  0x40   :  { %359 = vmatpush1.bf16.msra.mxu0 %v358_v14  ;;  %v101_v36 = vld [vmem:[#allocation7 + $0x128] sm:$0xff]  ;;  %389 = vmatprep.subr.bf16.mxu1 %v388_v33  ;;  %v87_v39 = vld [vmem:[#allocation7 + $0xb8] sm:$0xff]  ;;  %v82_v40 = vld [vmem:[#allocation7 + $0x90] sm:$0xff]  ;;  %v366_v42 = vpack.c.bf16 %v92_v32, %v88_v31 }
  0x41   :  { %361 = vmatprep.subr.bf16.mxu0 %v360_v17  ;;  %v86_v41 = vld [vmem:[#allocation7 + $0xb0] sm:$0xff]  ;;  %v96_v43 = vld [vmem:[#allocation7 + $0x100] sm:$0xff]  ;;  %v392_v45 = vpack.c.bf16 %v87_v39, %v83_v38  ;;  %v368_v46 = vpack.c.bf16 %v101_v36, %v97_v35  ;;  %v105_v47 = vld [vmem:[#allocation7 + $0x148] sm:$0xff]  ;;  %v130_v36 = vlaneseq }
  0x42   :  { %v100_v44 = vld [vmem:[#allocation7 + $0x120] sm:$0xff]  ;;  %391 = vmatpush1.bf16.msra.mxu1 %v390_v37  ;;  %v394_v48 = vpack.c.bf16 %v86_v41, %v82_v40  ;;  %v91_v49 = vld [vmem:[#allocation7 + $0xd8] sm:$0xff]  ;;  %v109_v51 = vld [vmem:[#allocation7 + $0x168] sm:$0xff] }
  0x43   :  { %v95_v50 = vld [vmem:[#allocation7 + $0xf8] sm:$0xff]  ;;  %393 = vmatprep.subr.bf16.mxu1 %v392_v45  ;;  %v90_v53 = vld [vmem:[#allocation7 + $0xd0] sm:$0xff]  ;;  %v370_v55 = vpack.c.bf16 %v100_v44, %v96_v43  ;;  %v372_v58 = vpack.c.bf16 %v109_v51, %v105_v47  ;;  %v104_v59 = vld [vmem:[#allocation7 + $0x140] sm:$0xff]  ;;  %v131_v37 = vshrl.u32 %v130_v36, 7 }
  0x44   :  { %363 = vmatpush1.bf16.msra.mxu0 %v362_v26  ;;  %v396_v52 = vpack.c.bf16 %v95_v50, %v91_v49  ;;  %v94_v54 = vld [vmem:[#allocation7 + $0xf0] sm:$0xff]  ;;  %v99_v56 = vld [vmem:[#allocation7 + $0x118] sm:$0xff]  ;;  %v108_v60 = vld [vmem:[#allocation7 + $0x160] sm:$0xff] }
  0x45   :  { %365 = vmatprep.subr.bf16.mxu0 %v364_v30  ;;  %v103_v57 = vld [vmem:[#allocation7 + $0x138] sm:$0xff]  ;;  %v113_v61 = vld [vmem:[#allocation7 + $0x188] sm:$0xff]  ;;  %v398_v62 = vpack.c.bf16 %v94_v54, %v90_v53  ;;  %v98_v1 = vld [vmem:[#allocation7 + $0x110] sm:$0xff]  ;;  %v374_v5 = vpack.c.bf16 %v108_v60, %v104_v59  ;;  %v132_v38 = vsub.s32 0, %v131_v37  ;;  %v136_v40 = vsub.s32 1, %v131_v37 }
  0x46   :  { %395 = vmatpush1.bf16.msra.mxu1 %v394_v48  ;;  %v117_v63 = vld [vmem:[#allocation7 + $0x1a8] sm:$0xff]  ;;  %v400_v0 = vpack.c.bf16 %v103_v57, %v99_v56  ;;  %v102_v2 = vld [vmem:[#allocation7 + $0x130] sm:$0xff]  ;;  %v107_v3 = vld [vmem:[#allocation7 + $0x158] sm:$0xff]  ;;  %v144_v43 = vsub.s32 3, %v131_v37  ;;  %v140_v51 = vsub.s32 2, %v131_v37 }
  0x47   :  { %397 = vmatprep.subr.bf16.mxu1 %v396_v52  ;;  %v111_v4 = vld [vmem:[#allocation7 + $0x178] sm:$0xff]  ;;  %v376_v6 = vpack.c.bf16 %v117_v63, %v113_v61  ;;  %v112_v7 = vld [vmem:[#allocation7 + $0x180] sm:$0xff]  ;;  %v121_v9 = vld [vmem:[#allocation7 + $0x1c8] sm:$0xff]  ;;  %v402_v10 = vpack.c.bf16 %v102_v2, %v98_v1 }
  0x48   :  { %367 = vmatpush1.bf16.msra.mxu0 %v366_v42  ;;  %v116_v8 = vld [vmem:[#allocation7 + $0x1a0] sm:$0xff]  ;;  %v125_v11 = vld [vmem:[#allocation7 + $0x1e8] sm:$0xff]  ;;  %v404_v12 = vpack.c.bf16 %v111_v4, %v107_v3  ;;  %v106_v13 = vld [vmem:[#allocation7 + $0x150] sm:$0xff] }
  0x49   :  { %369 = vmatprep.subr.bf16.mxu0 %v368_v46  ;;  %v110_v14 = vld [vmem:[#allocation7 + $0x170] sm:$0xff]  ;;  %v115_v15 = vld [vmem:[#allocation7 + $0x198] sm:$0xff]  ;;  %v378_v17 = vpack.c.bf16 %v116_v8, %v112_v7  ;;  %v380_v18 = vpack.c.bf16 %v125_v11, %v121_v9  ;;  %v120_v19 = vld [vmem:[#allocation7 + $0x1c0] sm:$0xff] }
  0x4a   :  { %399 = vmatpush1.bf16.msra.mxu1 %v398_v62  ;;  %v119_v16 = vld [vmem:[#allocation7 + $0x1b8] sm:$0xff]  ;;  %v124_v20 = vld [vmem:[#allocation7 + $0x1e0] sm:$0xff]  ;;  %v406_v21 = vpack.c.bf16 %v110_v14, %v106_v13  ;;  %v114_v23 = vld [vmem:[#allocation7 + $0x190] sm:$0xff] }
  0x4b   :  { %401 = vmatprep.subr.bf16.mxu1 %v400_v0  ;;  %v408_v22 = vpack.c.bf16 %v119_v16, %v115_v15  ;;  %v118_v24 = vld [vmem:[#allocation7 + $0x1b0] sm:$0xff]  ;;  %v123_v25 = vld [vmem:[#allocation7 + $0x1d8] sm:$0xff]  ;;  %v382_v27 = vpack.c.bf16 %v124_v20, %v120_v19 }
  0x4c   :  { %371 = vmatpush1.bf16.msra.mxu0 %v370_v55  ;;  %v127_v26 = vld [vmem:[#allocation7 + $0x1f8] sm:$0xff]  ;;  %v61_v28 = vld [vmem:[%s667_s0] sm:$0xff]  ;;  %v410_v30 = vpack.c.bf16 %v118_v24, %v114_v23 }
  0x4d   :  { %373 = vmatprep.subr.bf16.mxu0 %v372_v58  ;;  %v62_v29 = vld [vmem:[#allocation2] sm:$0xff]  ;;  %v412_v31 = vpack.c.bf16 %v127_v26, %v123_v25  ;;  %v311_v0 = vld [vmem:[#allocation5] sm:$0xff] }
  0x4e   :  { %403 = vmatpush1.bf16.msra.mxu1 %v402_v10  ;;  %v122_v32 = vld [vmem:[#allocation7 + $0x1d0] sm:$0xff]  ;;  %v63_v34 = vadd.f32 %v62_v29, %v61_v28 }
  0x4f   :  { %405 = vmatprep.subr.bf16.mxu1 %v404_v12  ;;  %v126_v33 = vld [vmem:[#allocation7 + $0x1f0] sm:$0xff] }
  0x50   :  { %375 = vmatpush1.bf16.msra.mxu0 %v374_v5  ;;  %v414_v35 = vpack.c.bf16 %v126_v33, %v122_v32  ;;  %v128_v39 = vld [vmem:[%s671_s4] sm:$0xf]  ;;  %s564_s4 = smov [#allocation9]  }
  0x51   :  { %377 = vmatprep.subr.bf16.mxu0 %v376_v6  ;;  %v133_v41 = vrot.slane %v128_v39, %v132_v38  ;;  %v137_v42 = vrot.slane %v128_v39, %v136_v40  ;;  %v145_v49 = vrot.slane %v128_v39, %v144_v43  ;;  %v141_v55 = vrot.slane %v128_v39, %v140_v51  ;;  %s335_s11 = sshll.u32 %s564_s4, 4  ;;  %s336_s11 = int_to_ptr.vmem [resolvable:$true] %s335_s11 }
  0x52   :  { %407 = vmatpush1.bf16.msra.mxu1 %v406_v21  ;;  %s506_s12 = scalar_lea.vmem %s336_s11, 128  ;;  %p511_p11 = scmp.lt.s32.totalorder %s336_s11, %s336_s11 }
  0x53   :  { %409 = vmatprep.subr.bf16.mxu1 %v408_v22  ;;  %p507_p10 = scmp.ne.s32.totalorder %s336_s11, %s506_s12  ;;  %p512_p12 = scmp.lt.s32.totalorder %s506_s12, %s506_s12 }
  0x54   :  { %379 = vmatpush1.bf16.msra.mxu0 %v378_v17 }
  0x55   :  { %381 = vmatprep.subr.bf16.mxu0 %v380_v18  ;;  %p513_p13 = por %p512_p12, %p511_p11 }
  0x56   :  { %411 = vmatpush1.bf16.msra.mxu1 %v410_v30 }
  0x57   :  { %413 = vmatprep.subr.bf16.mxu1 %v412_v31  ;;  %p514_p0 = pnand %p513_p13, %p507_p10 }
  0x58   :  { %383 = vmatpush1.bf16.msra.mxu0 %v382_v27 }
  0x5a   :  { %415 = vmatpush1.bf16.msra.mxu1 %v414_v35 }
  0x5b   :  { %215 = vmatmul.mubr.f32.vlgmr.msra.gmra.mrb[0].mxu0 %v63_v34 }
  0x5d   :  { %286 = vmatmul.mubr.f32.vlgmr.msra.gmra.mrb[0].mxu1 %v63_v34 }
 0x12e   :  { %v216_v44 = vpop.f32.mrb[0].mxu0 }
 0x12f   :  { %v217_v45 = vadd.f32 %v216_v44, %v133_v41  ;;  %v218_v46 = vpop.f32.mrb[1].mxu0 }
 0x130   :  { %v219_v47 = vadd.f32 %v218_v46, %v137_v42  ;;  %v287_v52 = vpop.f32.mrb[0].mxu1 }
 0x131   :  { %v349_v48 = vmul.f32 -1.442695, %v217_v45  ;;  %v289_v53 = vpop.f32.mrb[1].mxu1  ;;  %v288_v57 = vadd.f32 %v287_v52, %v141_v55 }
 0x132   :  { %v350_v50 = vmul.f32 -1.442695, %v219_v47  ;;  %v290_v54 = vadd.f32 %v289_v53, %v145_v49 }
 0x133   :  { %424 = vpow2.f32 %v349_v48 }
 0x134   :  { %426 = vpow2.f32 %v350_v50  ;;  %v351_v56 = vmul.f32 -1.442695, %v290_v54 }
 0x136   :  { %428 = vpow2.f32 %v351_v56 }
 0x137   :  { %430 = vtanh.f32 %v288_v57 }
 0x13d   :  { %v425_v58 = vpop.eup %424 }
 0x13e   :  { %v427_v59 = vpop.eup %426  ;;  %v295_v60 = vadd.f32 1.0, %v425_v58 }
 0x13f   :  { %v301_v61 = vadd.f32 1.0, %v427_v59 }
 0x140   :  { %432 = vrcp.f32 %v295_v60  ;;  %v429_v62 = vpop.eup %428 }
 0x141   :  { %434 = vrcp.f32 %v301_v61  ;;  %v431_v63 = vpop.eup %430  ;;  %v308_v2 = vadd.f32 1.0, %v429_v62 }
 0x143   :  { %436 = vrcp.f32 %v308_v2 }
 0x14a   :  { %v433_v1 = vpop.eup %432 }
 0x14b   :  { %v435_v3 = vpop.eup %434  ;;  %v313_v4 = vmul.f32 %v433_v1, %v431_v63 }
 0x14c   :  { %v312_v5 = vmul.f32 %v435_v3, %v311_v0 }
 0x14e   :  { %v314_v6 = vadd.f32 %v313_v4, %v312_v5 }
 0x150   :  { %318 = vst [vmem:[#allocation9] sm:$0xff] %v314_v6  ;;  %438 = vtanh.f32 %v314_v6 }
 0x151   :  { %517 = shalt.err (!%p514_p0)
}
 0x152   :  { %s518_s15 = scalar_lea.hbm %s673_s6, 128 }
 0x153   :  { %p519_p1 = scmp.ne.s32.totalorder %s673_s6, %s518_s15  ;;  %p522_p2 = scmp.lt.u32.totalorder %s518_s15, %s673_s6 }
 0x155   :  { %p524_p3 = pnand %p522_p2, %p519_p1 }
 0x157   :  { %527 = shalt.err (!%p524_p3)
}
 0x158   :  { %338 = dma.vmem_to_hbm [thread:$0]  %s336_s11, 128, %s673_s6, [#allocation10]   ;;  %v437_v7 = vpop.eup %436 }
 0x159   :  { %s565_s21 = smov [#allocation8]  }
 0x15a   :  { %s325_s22 = sshll.u32 %s565_s21, 4  ;;  %v439_v8 = vpop.eup %438  ;;  %s326_s22 = int_to_ptr.vmem [resolvable:$true] %s325_s22 }
 0x15b   :  { %v316_v9 = vmul.f32 %v439_v8, %v437_v7  ;;  %s528_s23 = scalar_lea.vmem %s326_s22, 128  ;;  %p533_p5 = scmp.lt.s32.totalorder %s326_s22, %s326_s22 }
 0x15c   :  { %p529_p4 = scmp.ne.s32.totalorder %s326_s22, %s528_s23  ;;  %p534_p6 = scmp.lt.s32.totalorder %s528_s23, %s528_s23 }
 0x15d   :  { %317 = vst [vmem:[#allocation8] sm:$0xff] %v316_v9 }
 0x15e   :  { %p535_p7 = por %p534_p6, %p533_p5 }
 0x160   :  { %p536_p8 = pnand %p535_p7, %p529_p4 }
 0x162   :  { %539 = shalt.err (!%p536_p8)
}
 0x163   :  { %s540_s27 = scalar_lea.hbm %s672_s5, 128 }
 0x164   :  { %p541_p9 = scmp.ne.s32.totalorder %s672_s5, %s540_s27  ;;  %p544_p10 = scmp.lt.u32.totalorder %s540_s27, %s672_s5 }
 0x166   :  { %p546_p11 = pnand %p544_p10, %p541_p9 }
 0x168   :  { %549 = shalt.err (!%p546_p11)
}
 0x169   :  { %328 = dma.vmem_to_hbm [thread:$0]  %s326_s22, 128, %s672_s5, [#allocation4]  }
 0x16a   :  { %554 = dma.done.wait [#allocation4], 128  }
 0x16b   :  { %555 = vsyncadd [#allocation4], 4294967168 }
 0x16c   :  { %556 = dma.done.wait [#allocation10], 128  }
 0x16d   :  { %557 = vsyncadd [#allocation10], 4294967168 }
 0x16e   :  { %345 = vsyncpa [#allocation3], 1 }
 0x16f   :  { %346 = vsyncpa [#allocation6], 1 }
 0x170   :  { %347 = vsyncpa [#allocation4], 1 }
 0x171   :  { %348 = vsyncpa [#allocation10], 1 }

</bundles_post_ra>
